<compile_context>
chip_gen: v6e
topology: v6e:2x2x1
jax: 0.10.0
libtpu: 0.0.40
codegen_flags: <defaults>
</compile_context>

<pallas_src>
import functools

import jax
import jax.numpy as jnp
from jax.experimental import pallas as pl
from jax.experimental.pallas import tpu as pltpu

EPS = 1e-6
MiB = 1024 * 1024
_T_TILE_CAP = 2048        # lane-dim tile upper bound (multiple of 128)
_MIN_GRID_STEPS = 4       # pipelining overlap + v7x 2-TC sharding


# ---------------- sizing helpers ----------------

def _round_up(x, m):
    return (x + m - 1) // m * m


def _vmem_capacity_bytes():
    """Physical VMEM per core, generation-aware (fallback: v7x 64 MiB)."""
    try:
        cap = int(getattr(pltpu.get_tpu_info(), "vmem_capacity_bytes", 0))
        if cap > 0:
            return cap
    except Exception:
        pass
    return 64 * MiB


def _vmem_budgets():
    """(tile_chooser_budget_bytes, vmem_limit_cap_bytes)."""
    cap = _vmem_capacity_bytes()
    # ~5/8 of physical: 40 MiB on v7x (64 MiB VMEM), 64 MiB on v5e/v6e (128 MiB)
    vmem_limit_cap = int(min(64 * MiB, (cap * 5) // 8))
    tile_budget = max(12 * MiB, vmem_limit_cap - 8 * MiB)  # Mosaic scratch headroom
    return tile_budget, vmem_limit_cap


def _block_bytes(shape):
    *lead, f, t = shape
    n = 1
    for d in lead:
        n *= d
    return n * _round_up(f, 8) * _round_up(t, 128) * 4


def _choose_t_tile(B, C, F, T, *, n_in_planes=2, n_out_planes=2,
                   in_depth=3, out_depth=2, budget_bytes=None):
    """Largest lane-aligned T tile that (a) fits the buffered per-step
    working set in the generation-aware VMEM budget, (b) keeps the total
    grid at >= _MIN_GRID_STEPS steps (and >= 2 when B == 1, for v7x's two
    TensorCores) whenever T permits a 128-aligned split."""
    if budget_bytes is None:
        budget_bytes, _ = _vmem_budgets()
    col_bytes = (in_depth * n_in_planes + out_depth * n_out_planes) \
        * C * _round_up(F, 8) * 4
    tt_budget = max(128, (budget_bytes // max(col_bytes, 1)) // 128 * 128)
    cap = min(_T_TILE_CAP, tt_budget)
    want_nt = -(-_MIN_GRID_STEPS // max(B, 1))          # ceil(4 / B)
    if B == 1:
        want_nt = max(want_nt, 2)
    if T > 128 and want_nt > 1:
        split_tt = max(128, _round_up(-(-T // want_nt), 128))
        if split_tt < T:                                # only if it yields >1 tile
            cap = min(cap, split_tt)
    if T <= cap:
        return T            # whole T as one lane-dense block (legal full-dim)
    return int(cap)         # multiple of 128; ragged tail handled by Pallas


def _compiler_params(in_blocks, out_blocks, in_depth, out_depth=2):
    per_step = (in_depth * sum(_block_bytes(s) for s in in_blocks)
                + out_depth * sum(_block_bytes(s) for s in out_blocks))
    _, vmem_cap = _vmem_budgets()
    vmem_limit = int(min(vmem_cap, max(16 * MiB, per_step + 4 * MiB)))
    return pltpu.CompilerParams(
        dimension_semantics=("parallel", "parallel"),
        vmem_limit_bytes=vmem_limit)


# ---------------- depth-3 input buffering (probed once) ----------------

_BUFFERED_INPUT_OK = None


def _probe_kernel(x_ref, o_ref):
    o_ref[...] = x_ref[...] * 2.0


def _buffered_inputs_supported():
    """One tiny compile to confirm pipeline_mode=pl.Buffered(3) lowers."""
    global _BUFFERED_INPUT_OK
    if _BUFFERED_INPUT_OK is None:
        try:
            x = jnp.zeros((8, 512), jnp.float32)
            out = pl.pallas_call(
                _probe_kernel,
                out_shape=jax.ShapeDtypeStruct((8, 512), jnp.float32),
                grid=(4,),
                in_specs=[pl.BlockSpec((8, 128), lambda i: (0, i),
                                       pipeline_mode=pl.Buffered(3))],
                out_specs=pl.BlockSpec((8, 128), lambda i: (0, i)),
            )(x)
            jax.block_until_ready(out)
            _BUFFERED_INPUT_OK = True
        except Exception:
            _BUFFERED_INPUT_OK = False
    return _BUFFERED_INPUT_OK


def _x_spec(C, F, tT, depth):
    idx = lambda b, t: (b, 0, 0, t)
    if depth > 2:
        return pl.BlockSpec((1, C, F, tT), idx, pipeline_mode=pl.Buffered(depth))
    return pl.BlockSpec((1, C, F, tT), idx)


# ---------------- Pallas kernels ----------------

def _utt_online_norm_kernel(ref_channel, eps, xre_ref, xim_ref,
                            yre_ref, yim_ref, mm_ref):
    """Block = (1, C, F, tT): one batch element x one T tile per grid step."""
    xre = xre_ref[...]                              # (1, C, F, tT)
    xim = xim_ref[...]
    rre = xre[:, ref_channel:ref_channel + 1].astype(jnp.float32)  # (1,1,F,tT)
    rim = xim[:, ref_channel:ref_channel + 1].astype(jnp.float32)
    # TODO(synk): sqrt(re^2+im^2) (not hypot) -- fine for audio-scale inputs.
    mag = jnp.sqrt(rre * rre + rim * rim)           # |Xr|
    mm = jnp.mean(mag, axis=2, keepdims=True) + eps  # (1, 1, 1, tT)
    inv = pl.reciprocal(mm, approx=False)           # exact: one recip per col
    yre_ref[...] = (xre.astype(jnp.float32) * inv).astype(yre_ref.dtype)
    yim_ref[...] = (xim.astype(jnp.float32) * inv).astype(yim_ref.dtype)
    mm_ref[...] = mm.astype(mm_ref.dtype)


def _scale_kernel(inverse, xre_ref, xim_ref, mm_ref, yre_ref, yim_ref):
    """Y = X * mm (inverse) or X * (1/mm); mm broadcast over C (and F/T)."""
    mm = mm_ref[...].astype(jnp.float32)
    scale = mm if inverse else pl.reciprocal(mm, approx=False)
    yre_ref[...] = (xre_ref[...].astype(jnp.float32) * scale).astype(yre_ref.dtype)
    yim_ref[...] = (xim_ref[...].astype(jnp.float32) * scale).astype(yim_ref.dtype)


# ---------------- pallas_call wrappers ----------------

def utterance_online_norm(xre, xim, *, ref_channel=0, eps=EPS, t_tile=None,
                          out_dtype=None, donate=False):
    B, C, F, T = xre.shape
    out_dtype = xre.dtype if out_dtype is None else out_dtype
    tT = t_tile if t_tile is not None else _choose_t_tile(B, C, F, T)
    nT = pl.cdiv(T, tT)
    in_depth = 3 if (B * nT >= 3 and _buffered_inputs_supported()) else 2
    x_in_spec = _x_spec(C, F, tT, in_depth)
    x_out_spec = _x_spec(C, F, tT, 2)
    mm_spec = pl.BlockSpec((1, 1, 1, tT), lambda b, t: (b, 0, 0, t))
    out_shape = (
        jax.ShapeDtypeStruct((B, C, F, T), out_dtype),   # Y real
        jax.ShapeDtypeStruct((B, C, F, T), out_dtype),   # Y imag
        jax.ShapeDtypeStruct((B, 1, 1, T), jnp.float32),  # XrMM (kept f32)
    )
    kernel = functools.partial(_utt_online_norm_kernel, ref_channel, eps)
    io_alias = {0: 0, 1: 1} if (donate and out_dtype == xre.dtype) else {}
    return pl.pallas_call(
        kernel,
        out_shape=out_shape,
        grid=(B, nT),
        in_specs=[x_in_spec, x_in_spec],
        out_specs=(x_out_spec, x_out_spec, mm_spec),
        input_output_aliases=io_alias,
        compiler_params=_compiler_params(
            [(1, C, F, tT)] * 2,
            [(1, C, F, tT)] * 2 + [(1, 1, 1, tT)],
            in_depth),
    )(xre, xim)


def scale_by_norm(xre, xim, mm, *, inverse, t_tile=None, out_dtype=None,
                  donate=False):
    """Y = X * mm (inverse=True) or X / mm (inverse=False)."""
    B, C, F, T = xre.shape
    Bm, Cm, Fm, Tm = mm.shape
    assert Bm == B and Cm == 1 and Fm in (1, F) and Tm in (1, T), mm.shape
    out_dtype = xre.dtype if out_dtype is None else out_dtype
    tT = t_tile if t_tile is not None else _choose_t_tile(B, C, F, T)
    nT = pl.cdiv(T, tT)
    in_depth = 3 if (B * nT >= 3 and _buffered_inputs_supported()) else 2
    x_in_spec = _x_spec(C, F, tT, in_depth)
    x_out_spec = _x_spec(C, F, tT, 2)
    if Tm == T:
        mm_block = (1, 1, Fm, tT)
        mm_spec = pl.BlockSpec(mm_block, lambda b, t: (b, 0, 0, t))
    else:  # Tm == 1 (offline statistics)
        mm_block = (1, 1, Fm, 1)
        mm_spec = pl.BlockSpec(mm_block, lambda b, t: (b, 0, 0, 0))
    out_shape = (
        jax.ShapeDtypeStruct((B, C, F, T), out_dtype),
        jax.ShapeDtypeStruct((B, C, F, T), out_dtype),
    )
    kernel = functools.partial(_scale_kernel, inverse)
    io_alias = {0: 0, 1: 1} if (donate and out_dtype == xre.dtype) else {}
    return pl.pallas_call(
        kernel,
        out_shape=out_shape,
        grid=(B, nT),
        in_specs=[x_in_spec, x_in_spec, mm_spec],
        out_specs=(x_out_spec, x_out_spec),
        input_output_aliases=io_alias,
        compiler_params=_compiler_params(
            [(1, C, F, tT)] * 2 + [mm_block],
            [(1, C, F, tT)] * 2,
            in_depth),
    )(xre, xim, mm)


# ---------------- module wrapper ----------------

def _is_planes(X):
    return isinstance(X, (tuple, list))


def _split_planes(X):
    """Accepts either (re, im) float32 planes (preferred: zero extra HBM
    passes) or a complex array (one split at the boundary)."""
    if _is_planes(X):
        return X[0], X[1], True
    return (jnp.real(X).astype(jnp.float32),
            jnp.imag(X).astype(jnp.float32), False)


def _join_planes(yre, yim, planes):
    return (yre, yim) if planes else jax.lax.complex(yre, yim)


class Norm:
    """JAX/Pallas port of models/io/norm.py::Norm (no learnable parameters).

    X may be a complex [B,C,F,T] array (PyTorch-compatible) or a tuple of
    float32 (real, imag) planes; outputs mirror the input format.
    """

    def __init__(self, mode="utterance", online=True):
        assert mode != "forgetting" or online is True
        self.mode = mode
        self.online = online

    def __call__(self, X, norm_paras=None, inverse=False):
        if not inverse:
            return self.norm(X, norm_paras=norm_paras)
        return self.inorm(X, norm_paras=norm_paras)

    def norm(self, X, norm_paras=None, ref_channel=0, eps=EPS):
        if self.mode == "none" or self.mode is None:
            if _is_planes(X):
                Xr = (X[0][:, ref_channel:ref_channel + 1],
                      X[1][:, ref_channel:ref_channel + 1])
            else:
                Xr = X[:, ref_channel:ref_channel + 1]
            return X, (Xr, None)

        xre, xim, planes = _split_planes(X)
        if norm_paras is None:
            if not (self.mode == "utterance" and self.online):
                # TODO(synk): 'frequency', 'forgetting', offline 'utterance'
                # statistic computation is not kernelized.
                raise NotImplementedError(
                    f"mode={self.mode}, online={self.online} not kernelized")
            yre, yim, mm = utterance_online_norm(
                xre, xim, ref_channel=ref_channel, eps=eps)
            # Xr is byte-identical to X[:, ref]; slice it in the wrapper
            # instead of paying kernel store + DMA writeback for it.
            if planes:
                Xr = (xre[:, ref_channel:ref_channel + 1],
                      xim[:, ref_channel:ref_channel + 1])
            else:
                Xr = X[:, ref_channel:ref_channel + 1]
        else:
            Xr, mm = norm_paras
            yre, yim = scale_by_norm(xre, xim, mm, inverse=False)
        return _join_planes(yre, yim, planes), (Xr, mm)

    def inorm(self, X, norm_paras):
        if self.mode == "none" or self.mode is None:
            return X
        _, mm = norm_paras
        xre, xim, planes = _split_planes(X)
        yre, yim = scale_by_norm(xre, xim, mm, inverse=True)
        return _join_planes(yre, yim, planes)


# ---------------- demo / self-check ----------------

if __name__ == "__main__":
    key = jax.random.PRNGKey(0)
    B, C, F, T = 2, 4, 16, 16
    kre, kim = jax.random.split(key)
    xre = jax.random.normal(kre, (B, C, F, T), dtype=jnp.float32)
    xim = jax.random.normal(kim, (B, C, F, T), dtype=jnp.float32)

    norm = Norm(mode="utterance", online=True)

    # --- preferred interface: float32 real/imag planes end-to-end ---
    (yre, yim), (Xr_p, XrMM) = norm((xre, xim))
    (y2re, y2im), _ = norm((xre, xim), norm_paras=(Xr_p, XrMM))   # re-apply
    xrec_re, xrec_im = norm((yre, yim), norm_paras=(Xr_p, XrMM), inverse=True)
    jax.block_until_ready((yre, yim, y2re, y2im, xrec_re, xrec_im, XrMM))

    # pure-JAX (complex) reference of the PyTorch semantics
    X = jax.lax.complex(xre, xim)                        # [B, C, F, T] c64
    mm_ref = jnp.mean(jnp.abs(X[:, 0:1]), axis=2, keepdims=True) + EPS
    Y_ref = X / mm_ref
    assert jnp.allclose(XrMM, mm_ref, rtol=1e-5, atol=1e-6)
    assert jnp.allclose(jax.lax.complex(yre, yim), Y_ref, rtol=1e-5, atol=1e-5)
    assert jnp.allclose(jax.lax.complex(y2re, y2im), Y_ref, rtol=1e-5, atol=1e-5)
    assert jnp.allclose(jax.lax.complex(*Xr_p), X[:, 0:1], rtol=1e-6, atol=1e-6)
    assert jnp.allclose(jax.lax.complex(xrec_re, xrec_im), X,
                        rtol=1e-5, atol=1e-5)

    # --- PyTorch-compatible complex interface (single split/combine) ---
    Yc, (Xrc, XrMMc) = norm(X)
    Xc_rec = norm(Yc, norm_paras=(Xrc, XrMMc), inverse=True)
    jax.block_until_ready((Yc, Xc_rec))
    assert jnp.allclose(Yc, Y_ref, rtol=1e-5, atol=1e-5)
    assert jnp.allclose(Xrc, X[:, 0:1], rtol=1e-6, atol=1e-6)
    assert jnp.allclose(Xc_rec, X, rtol=1e-5, atol=1e-5)

    # --- exercise auto T tiling (B=1 -> forced multi-tile grid), a ragged
    #     last tile, depth-3 input buffering, and ref_channel != 0 ---
    B2, C2, F2, T2 = 1, 3, 16, 640
    k1, k2 = jax.random.split(jax.random.PRNGKey(1))
    xre2 = jax.random.normal(k1, (B2, C2, F2, T2), dtype=jnp.float32)
    xim2 = jax.random.normal(k2, (B2, C2, F2, T2), dtype=jnp.float32)
    assert _choose_t_tile(B2, C2, F2, T2) < T2          # grid did not collapse
    y2r, y2i, mm2 = utterance_online_norm(xre2, xim2, ref_channel=1)
    jax.block_until_ready((y2r, y2i, mm2))
    X2 = jax.lax.complex(xre2, xim2)
    mm2_ref = jnp.mean(jnp.abs(X2[:, 1:2]), axis=2, keepdims=True) + EPS
    assert jnp.allclose(mm2, mm2_ref, rtol=1e-5, atol=1e-6)
    assert jnp.allclose(jax.lax.complex(y2r, y2i), X2 / mm2_ref,
                        rtol=1e-5, atol=1e-5)

    # --- optional bf16 output-plane path (XrMM stays f32) ---
    ybr, ybi, mmb = utterance_online_norm(xre, xim, out_dtype=jnp.bfloat16)
    jax.block_until_ready((ybr, ybi, mmb))
    assert mmb.dtype == jnp.float32
    assert jnp.allclose(ybr.astype(jnp.float32), jnp.real(Y_ref),
                        rtol=2e-2, atol=2e-2)
    assert jnp.allclose(ybi.astype(jnp.float32), jnp.imag(Y_ref),
                        rtol=2e-2, atol=2e-2)

    print("KERNEL_OK")
</pallas_src>

<mosaic_0001>
module attributes {stable_mosaic.version = 11 : i64} {
  func.func @_utt_online_norm_kernel(%arg0: i32, %arg1: i32, %arg2: memref<1x4x16x16xf32, #tpu.memory_space<vmem>>, %arg3: memref<1x4x16x16xf32, #tpu.memory_space<vmem>>, %arg4: memref<1x4x16x16xf32, #tpu.memory_space<vmem>>, %arg5: memref<1x4x16x16xf32, #tpu.memory_space<vmem>>, %arg6: memref<1x1x1x16xf32, #tpu.memory_space<vmem>>) attributes {dimension_semantics = [#tpu.dimension_semantics<parallel>, #tpu.dimension_semantics<parallel>], iteration_bounds = array<i64: 2, 1>, scalar_prefetch = 0 : i64, scratch_operands = 0 : i64, tpu.core_type = #tpu.core_type<tc>, window_params = [{transform_indices = @transform_0, window_bounds = array<i64: 1, 4, 16, 16>}, {transform_indices = @transform_1, window_bounds = array<i64: 1, 4, 16, 16>}, {transform_indices = @transform_2, window_bounds = array<i64: 1, 4, 16, 16>}, {transform_indices = @transform_3, window_bounds = array<i64: 1, 4, 16, 16>}, {transform_indices = @transform_4, window_bounds = array<i64: 1, 1, 1, 16>}]} {
    %c0 = arith.constant 0 : index
    %c0_0 = arith.constant 0 : index
    %c0_1 = arith.constant 0 : index
    %c0_2 = arith.constant 0 : index
    %0 = vector.load %arg2[%c0, %c0_0, %c0_1, %c0_2] : memref<1x4x16x16xf32, #tpu.memory_space<vmem>>, vector<1x4x16x16xf32>
    %c0_3 = arith.constant 0 : index
    %c0_4 = arith.constant 0 : index
    %c0_5 = arith.constant 0 : index
    %c0_6 = arith.constant 0 : index
    %1 = vector.load %arg3[%c0_3, %c0_4, %c0_5, %c0_6] : memref<1x4x16x16xf32, #tpu.memory_space<vmem>>, vector<1x4x16x16xf32>
    %2 = vector.extract_strided_slice %0 {offsets = [0, 0, 0, 0], sizes = [1, 1, 16, 16], strides = [1, 1, 1, 1]} : vector<1x4x16x16xf32> to vector<1x1x16x16xf32>
    %3 = vector.extract_strided_slice %1 {offsets = [0, 0, 0, 0], sizes = [1, 1, 16, 16], strides = [1, 1, 1, 1]} : vector<1x4x16x16xf32> to vector<1x1x16x16xf32>
    %4 = arith.mulf %2, %2 : vector<1x1x16x16xf32>
    %5 = arith.mulf %3, %3 : vector<1x1x16x16xf32>
    %6 = arith.addf %4, %5 : vector<1x1x16x16xf32>
    %7 = math.sqrt %6 : vector<1x1x16x16xf32>
    %cst = arith.constant dense<0.000000e+00> : vector<1x1x16xf32>
    %8 = vector.multi_reduction <add>, %7, %cst [2] : vector<1x1x16x16xf32> to vector<1x1x16xf32>
    %9 = vector.shape_cast %8 : vector<1x1x16xf32> to vector<1x1x1x16xf32>
    %cst_7 = arith.constant 1.600000e+01 : f32
    %10 = vector.broadcast %cst_7 : f32 to vector<1x1x1x16xf32>
    %11 = arith.divf %9, %10 : vector<1x1x1x16xf32>
    %cst_8 = arith.constant 9.99999997E-7 : f32
    %12 = vector.broadcast %cst_8 : f32 to vector<1x1x1x16xf32>
    %13 = arith.addf %11, %12 : vector<1x1x1x16xf32>
    %14 = tpu.reciprocal %13 : vector<1x1x1x16xf32> -> vector<1x1x1x16xf32>
    %15 = vector.broadcast %14 : vector<1x1x1x16xf32> to vector<1x4x16x16xf32>
    %16 = arith.mulf %0, %15 : vector<1x4x16x16xf32>
    %c0_9 = arith.constant 0 : index
    %c0_10 = arith.constant 0 : index
    %c0_11 = arith.constant 0 : index
    %c0_12 = arith.constant 0 : index
    %17 = vector.load %arg4[%c0_9, %c0_10, %c0_11, %c0_12] : memref<1x4x16x16xf32, #tpu.memory_space<vmem>>, vector<1x4x16x16xf32>
    tpu.vector_store %arg4[%c0_9, %c0_10, %c0_11, %c0_12], %16 {strides = array<i32>} : memref<1x4x16x16xf32, #tpu.memory_space<vmem>>, vector<1x4x16x16xf32>,
    %18 = vector.broadcast %14 : vector<1x1x1x16xf32> to vector<1x4x16x16xf32>
    %19 = arith.mulf %1, %18 : vector<1x4x16x16xf32>
    %c0_13 = arith.constant 0 : index
    %c0_14 = arith.constant 0 : index
    %c0_15 = arith.constant 0 : index
    %c0_16 = arith.constant 0 : index
    %20 = vector.load %arg5[%c0_13, %c0_14, %c0_15, %c0_16] : memref<1x4x16x16xf32, #tpu.memory_space<vmem>>, vector<1x4x16x16xf32>
    tpu.vector_store %arg5[%c0_13, %c0_14, %c0_15, %c0_16], %19 {strides = array<i32>} : memref<1x4x16x16xf32, #tpu.memory_space<vmem>>, vector<1x4x16x16xf32>,
    %c0_17 = arith.constant 0 : index
    %c0_18 = arith.constant 0 : index
    %c0_19 = arith.constant 0 : index
    %c0_20 = arith.constant 0 : index
    %21 = vector.load %arg6[%c0_17, %c0_18, %c0_19, %c0_20] : memref<1x1x1x16xf32, #tpu.memory_space<vmem>>, vector<1x1x1x16xf32>
    tpu.vector_store %arg6[%c0_17, %c0_18, %c0_19, %c0_20], %13 {strides = array<i32>} : memref<1x1x1x16xf32, #tpu.memory_space<vmem>>, vector<1x1x1x16xf32>,
    return
  }
  func.func @transform_0(%arg0: i32, %arg1: i32) -> (i32, i32, i32, i32) {
    %c0_i32 = arith.constant 0 : i32
    %c0_i32_0 = arith.constant 0 : i32
    %c0_i32_1 = arith.constant 0 : i32
    return %arg0, %c0_i32, %c0_i32_0, %arg1 : i32, i32, i32, i32
  }
  func.func @transform_1(%arg0: i32, %arg1: i32) -> (i32, i32, i32, i32) {
    %c0_i32 = arith.constant 0 : i32
    %c0_i32_0 = arith.constant 0 : i32
    %c0_i32_1 = arith.constant 0 : i32
    return %arg0, %c0_i32, %c0_i32_0, %arg1 : i32, i32, i32, i32
  }
  func.func @transform_2(%arg0: i32, %arg1: i32) -> (i32, i32, i32, i32) {
    %c0_i32 = arith.constant 0 : i32
    %c0_i32_0 = arith.constant 0 : i32
    %c0_i32_1 = arith.constant 0 : i32
    return %arg0, %c0_i32, %c0_i32_0, %arg1 : i32, i32, i32, i32
  }
  func.func @transform_3(%arg0: i32, %arg1: i32) -> (i32, i32, i32, i32) {
    %c0_i32 = arith.constant 0 : i32
    %c0_i32_0 = arith.constant 0 : i32
    %c0_i32_1 = arith.constant 0 : i32
    return %arg0, %c0_i32, %c0_i32_0, %arg1 : i32, i32, i32, i32
  }
  func.func @transform_4(%arg0: i32, %arg1: i32) -> (i32, i32, i32, i32) {
    %c0_i32 = arith.constant 0 : i32
    %c0_i32_0 = arith.constant 0 : i32
    %c0_i32_1 = arith.constant 0 : i32
    return %arg0, %c0_i32, %c0_i32_0, %arg1 : i32, i32, i32, i32
  }
}

</mosaic_0001>

<bundles_post_ra>
// kernel: tpu_custom_call.1
= control target key start
LH: loop header
LB: loop body
LE: loop exit
PB: predicated region body
PF: predicated region fallthrough
CT: control target
= control target key end

     0   :  { %s1289_s0 = inlined_call_operand.hbm [shape: f32[2,4,16,16], index: 0, kind: input, shape index: {}]   ;;  %s1290_s1 = inlined_call_operand.hbm [shape: f32[2,4,16,16], index: 1, kind: input, shape index: {}]   ;;  %s1291_s2 = inlined_call_operand.hbm [shape: f32[2,4,16,16], index: 2, kind: output, shape index: {0}]   ;;  %s1292_s3 = inlined_call_operand.hbm [shape: f32[2,4,16,16], index: 3, kind: output, shape index: {1}]   ;;  %s1293_s4 = inlined_call_operand.hbm [shape: f32[2,1,1,16], index: 4, kind: output, shape index: {2}]  }
   0x1   :  { %1296 = sst [smem:[#allocation17_spill]] %s1289_s0 }
   0x2   :  { %10 = vsyncpa [#allocation3], 0 }
   0x3   :  { %12 = vsyncpa [#allocation3 + $0x1], 0 }
   0x4   :  { %13 = vsyncpa [#allocation6], 0 }
   0x5   :  { %15 = vsyncpa [#allocation6 + $0x1], 0 }
   0x6   :  { %16 = vsyncpa [#allocation4], 0 }
   0x7   :  { %18 = vsyncpa [#allocation4 + $0x1], 0 }
   0x8   :  { %19 = vsyncpa [#allocation9], 0 }
   0x9   :  { %21 = vsyncpa [#allocation9 + $0x1], 0  ;;  %s953_s15 = smov 0   ;;  %s955_s16 = smov 0  }
   0xa   :  { %s957_s17 = smov 0   ;;  %s959_s18 = smov 0  }
   0xb   :  { %s961_s19 = smov 0   ;;  %s963_s20 = smov 0  }
   0xc LB: > { %s984_s21 = sadd.s32 4294967295, %s917_s20   ;;  %s1294_s22 = sadd.s32 4294967294, %s917_s20   ;;  %s917_s20 = sphi %s963_s20, %s27_s20   ;;  %s913_s19 = sphi %s961_s19, %s1313_s19   ;;  %s909_s18 = sphi %s959_s18, %s1312_s18   ;;  %s905_s17 = sphi %s957_s17, %s1311_s17   ;;  %s901_s16 = sphi %s955_s16, %s1310_s16   ;;  %s897_s15 = sphi %s953_s15, %s1309_s15  }
   0xd   : > { %s39_s23 = sadd.s32 1, %s913_s19  ;;  %s48_s24 = sadd.s32 1, %s905_s17 }
   0xe   : > { %p41_p0 = scmp.ge.s32.totalorder %s39_s23, 2  ;;  %p55_p1 = scmp.ne.s32.totalorder %s905_s17, %s901_s16 }
   0xf   : > { %p56_p2 = scmp.eq.s32.totalorder %s917_s20, 0  ;;  %p61_p3 = scmp.ne.s32.totalorder %s901_s16, %s897_s15 }
  0x10   : > { %s1315_s23 = smov (%p41_p0, %s39_s23), 0  ;;  %p62_p5 = scmp.eq.s32.totalorder %s984_s21, 0 }
  0x11   : > { %1297 = sst [smem:[#allocation15_spill]] %s1315_s23  ;;  %p996_p4 = por %p56_p2, %p55_p1 }
  0x12   : > { %s43_s26 = ssub.s32 %s913_s19, %s1315_s23  ;;  %p115_p6 = scmp.eq.s32.totalorder %s984_s21, 1 }
  0x13   : > { %p46_p7 = scmp.eq.s32.totalorder %s43_s26, 0  ;;  %p1004_p8 = por %p62_p5, %p61_p3 }
  0x14   : > { %p1008_p9 = por %p115_p6, %p55_p1  ;;  %p121_p10 = scmp.eq.s32.totalorder %s1294_s22, 1 }
  0x15   : > { %s1015_s29 = scalar_select %p46_p7, %s905_s17, %s48_s24  }
  0x16   : > { %p1017_p11 = por %p121_p10, %p61_p3  ;;  %p609_p12 = scmp.ge.s32.totalorder %s917_s20, 2 }
  0x17   : > { %1301 = sst [smem:[#allocation16_spill]] %s1015_s29  ;;  %p661_p13 = scmp.lt.s32.totalorder %s917_s20, 2 }
  0x18   : > { %s1024_s5 = sand.u32 1, %s905_s17   ;;  %s630_s7 = sshll.u32 %s913_s19, 10 }
  0x19   : > { %s610_s6 = sshll.u32 %s1024_s5, 6  ;;  %s1303_s0 = sld [smem:[#allocation17_spill]] }
  0x1a   : > { %s201_s11 = scalar_lea.vmem [#allocation2], %s610_s6  ;;  %p1037_p0 = pnand %p661_p13, %p996_p4 }
  0x1b   : > { %s209_s12 = sshll.u32 %s201_s11, 4  ;;  %p616_p1 = scmp.ge.s32.totalorder %s917_s20, 1  ;;  %s210_s12 = int_to_ptr.vmem [resolvable:$true] %s209_s12 }
  0x1c   : > { %s198_s14 = scalar_lea.sflag [#allocation3], %s1024_s5  ;;  %p723_p2 = pneg %p1037_p0 }
  0x1d   : > { %s734_s24 = scalar_lea.vmem %s210_s12, 1024  ;;  %s919_s26 = smov [#allocation2]  }
  0x1e   : > { %p735_p3 = scmp.ne.s32.totalorder %s210_s12, %s734_s24  ;;  %s739_s8 = sshll.u32 %s919_s26, 4  ;;  %s740_s8 = int_to_ptr.vmem [resolvable:$false] %s739_s8 }
  0x1f   : > { %s208_s10 = scalar_lea.hbm %s1303_s0, %s630_s7  ;;  %s741_s25 = scalar_lea.vmem %s740_s8, 2048 }
  0x20   : > { %p737_p5 = pnand %p735_p3, %p723_p2  ;;  %p742_p4 = scmp.lt.s32.totalorder %s210_s12, %s740_s8 }
  0x21   : > { %p743_p7 = scmp.lt.s32.totalorder %s741_s25, %s734_s24 }
  0x22   : > { %p738_p6 = pneg %p737_p5 }
  0x23   : > { %p744_p10 = por %p743_p7, %p742_p4 }
  0x25   : > { %p745_p13 = pnand %p744_p10, %p738_p6 }
  0x27   : > { %748 = shalt.err (!%p745_p13)
}
  0x28   : > { %s920_s9 = smov 128   ;;  %s921_s11 = smov 8  }
  0x29   : > { %647 = dma.hbm_to_vmem [thread:$0]  (!%p1037_p0), %s208_s10, 1024, %s210_s12, %s198_s14, %s920_s9, %s920_s9, %s921_s11  }
  0x2a   : > { %p239_p3 = scmp.lt.s32.totalorder %s917_s20, 3  ;;  %s230_s24 = scalar_lea.hbm %s1290_s1, %s630_s7 }
  0x2b   : > { %s223_s25 = scalar_lea.vmem [#allocation5], %s610_s6  ;;  %s220_s23 = scalar_lea.sflag [#allocation6], %s1024_s5 }
  0x2c   : > { %p1058_p5 = pnand %p616_p1, %p239_p3  ;;  %s231_s0 = sshll.u32 %s223_s25, 4  ;;  %s232_s0 = int_to_ptr.vmem [resolvable:$true] %s231_s0 }
  0x2d   : > { %s762_s29 = scalar_lea.vmem %s232_s0, 1024  ;;  %s922_s10 = smov [#allocation5]  }
  0x2e   : > { %p763_p6 = scmp.ne.s32.totalorder %s232_s0, %s762_s29  ;;  %s767_s12 = sshll.u32 %s922_s10, 4  ;;  %s768_s12 = int_to_ptr.vmem [resolvable:$false] %s767_s12 }
  0x2f   : > { %s769_s22 = scalar_lea.vmem %s768_s12, 2048  ;;  %p770_p10 = scmp.lt.s32.totalorder %s232_s0, %s768_s12 }
  0x30   : > { %p765_p4 = pnand %p763_p6, %p723_p2  ;;  %p771_p1 = scmp.lt.s32.totalorder %s769_s22, %s762_s29 }
  0x32   : > { %p766_p7 = pneg %p765_p4  ;;  %p772_p13 = por %p771_p1, %p770_p10 }
  0x34   : > { %p773_p3 = pnand %p772_p13, %p766_p7 }
  0x36   : > { %776 = shalt.err (!%p773_p3)
}
  0x37   : > { %650 = dma.hbm_to_vmem [thread:$0]  (!%p1037_p0), %s230_s24, 1024, %s232_s0, %s220_s23, %s920_s9, %s920_s9, %s921_s11  }
  0x38   : > { %243 = sbr.rel (%p1058_p5) target bundleno = 186 (0xba), region = 28  ;;  %s1073_s5 = sand.u32 (!%p1058_p5), 1, %s901_s16  }
  0x39   : > { %s1076_s6 = sshll.u32 (!%p1058_p5), %s1073_s5, 6  ;;  %s246_s7 = scalar_lea.sflag (!%p1058_p5), [#allocation3], %s1073_s5 }
  0x3a   : > { %s1080_s29 = scalar_lea.vmem (!%p1058_p5), [#allocation2], %s1076_s6 }
  0x3d   : > { %880 = dma.done.wait (%p1004_p8), %s246_s7, 1024  }
  0x3e   : > { %882 = vsyncadd (%p1004_p8), %s246_s7, 4294966272  ;;  %s255_s0 = scalar_lea.sflag [#allocation6], %s1073_s5  ;;  %s1088_s23 = scalar_lea.vmem [#allocation5], %s1076_s6 }
  0x3f   : > { %884 = dma.done.wait (%p1004_p8), %s255_s0, 1024  }
  0x40   : > { %886 = vsyncadd (%p1004_p8), %s255_s0, 4294966272  ;;  %v1095_v0 = vld [vmem:[%s1080_s29] sm:$0xff]  ;;  %v1098_v1 = vld [vmem:[%s1080_s29 + $0x8] sm:$0xff]  ;;  %vm333_vm4 = vcmask 130048   ;;  %vm379_vm5 = vcmask 122880   ;;  %s296_s27 = scalar_lea.vmem [#allocation10], %s1073_s5 }
  0x41   : > { %v305_v2 = vld [vmem:[%s1088_s23] sm:$0xff]  ;;  %v306_v3 = vld [vmem:[%s1088_s23 + $0x8] sm:$0xff]  ;;  %v313_v4 = vmul.f32 %v1095_v0, %v1095_v0  ;;  %v314_v5 = vmul.f32 %v1098_v1, %v1098_v1  ;;  %s1110_s13 = scalar_lea.vmem [#allocation8], %s1076_s6  ;;  %s1114_s9 = scalar_lea.vmem [#allocation7], %s1076_s6  ;;  %v307_v31 = vld [vmem:[%s1088_s23 + $0x10] sm:$0xff] }
  0x42   : > { %v315_v6 = vmul.f32 %v305_v2, %v305_v2  ;;  %v316_v7 = vmul.f32 %v306_v3, %v306_v3  ;;  %s422_s14 = sshll.u32 %s1110_s13, 4  ;;  %s405_s11 = sshll.u32 %s1114_s9, 4  ;;  %v308_v32 = vld [vmem:[%s1088_s23 + $0x18] sm:$0xff]  ;;  %v309_v33 = vld [vmem:[%s1088_s23 + $0x20] sm:$0xff]  ;;  %v310_v34 = vld [vmem:[%s1088_s23 + $0x28] sm:$0xff]  ;;  %s1117_s14 = int_to_ptr.vmem [resolvable:$true] %s422_s14  ;;  %s1126_s11 = int_to_ptr.vmem [resolvable:$true] %s405_s11 }
  0x43   : > { %s386_s26 = sand.u32 1, %s984_s21   ;;  %v311_v35 = vld [vmem:[%s1088_s23 + $0x30] sm:$0xff]  ;;  %v312_v36 = vld [vmem:[%s1088_s23 + $0x38] sm:$0xff]  ;;  %s632_s24 = sshll.u32 %s909_s18, 10  ;;  %v301_v40 = vld [vmem:[%s1080_s29 + $0x20] sm:$0xff] }
  0x44   : > { %v317_v8 = vadd.f32 %v315_v6, %v313_v4  ;;  %v318_v9 = vadd.f32 %v316_v7, %v314_v5  ;;  %v299_v38 = vld [vmem:[%s1080_s29 + $0x10] sm:$0xff]  ;;  %v300_v39 = vld [vmem:[%s1080_s29 + $0x18] sm:$0xff]  ;;  %s439_s8 = sshll.u32 %s296_s27, 4  ;;  %s627_s25 = sshll.u32 %s909_s18, 4  ;;  %v302_v45 = vld [vmem:[%s1080_s29 + $0x28] sm:$0xff]  ;;  %s1153_s8 = int_to_ptr.vmem [resolvable:$true] %s439_s8 }
  0x45   : > { %v303_v46 = vld [vmem:[%s1080_s29 + $0x30] sm:$0xff]  ;;  %v304_v47 = vld [vmem:[%s1080_s29 + $0x38] sm:$0xff]  ;;  %s1141_s22 = scalar_lea.hbm %s1292_s3, %s632_s24  ;;  %s1158_s29 = scalar_lea.hbm %s1293_s4, %s627_s25 }
  0x46   : > { %715 = vrsqrt.f32 %v317_v8  ;;  %vm321_vm0 = vcmp.eq.f32.partialorder %v317_v8, inf  ;;  %v324_v11 = vand.u32 2147483648, %v317_v8  ;;  %vm323_vm1 = vcmp.eq.f32.partialorder %v317_v8, 0.0  ;;  %s777_s25 = scalar_lea.vmem %s1117_s14, 1024  ;;  %s923_s18 = smov [#allocation8]  }
  0x47   : > { %717 = vrsqrt.f32 %v318_v9  ;;  %vm328_vm2 = vcmp.eq.f32.partialorder %v318_v9, inf  ;;  %v331_v14 = vand.u32 2147483648, %v318_v9  ;;  %vm330_vm3 = vcmp.eq.f32.partialorder %v318_v9, 0.0  ;;  %p778_p8 = scmp.ne.s32.totalorder %s1117_s14, %s777_s25  ;;  %s781_s10 = sshll.u32 %s923_s18, 4  ;;  %s782_s10 = int_to_ptr.vmem [resolvable:$false] %s781_s10 }
  0x48   : > { %p784_p5 = scmp.lt.s32.totalorder %s1117_s14, %s782_s10 }
  0x49   : > { %p779_p0 = pnand %p778_p8, %p1008_p9 }
  0x4b   : > { %p780_p2 = pneg %p779_p0 }
  0x53   : > { %v716_v10 = vpop.eup %715 }
  0x54   : > { %v718_v12 = vpop.eup %717  ;;  %v320_v13 = vmul.f32 %v716_v10, %v317_v8 }
  0x55   : > { %v327_v15 = vmul.f32 %v718_v12, %v318_v9 }
  0x56   : > { %v322_v16 = vsel %vm321_vm0, %v317_v8, %v320_v13 }
  0x57   : > { %v325_v17 = vsel %vm323_vm1, %v324_v11, %v322_v16  ;;  %v329_v18 = vsel %vm328_vm2, %v318_v9, %v327_v15 }
  0x58   : > { %v332_v19 = vsel %vm330_vm3, %v331_v14, %v329_v18  ;;  %v334_v20 = vsel %vm333_vm4, %v325_v17, 0.0 }
  0x59   : > { %v335_v21 = vsel %vm333_vm4, %v332_v19, 0.0 }
  0x5a   : > { %v336_v22 = vadd.f32 %v335_v21, %v334_v20 }
  0x5c   : > { %v337_v23 = vrot.slane %v336_v22, 4 }
  0x5e   : > { %v338_v24 = vadd.f32 %v337_v23, %v336_v22 }
  0x60   : > { %v339_v25 = vrot.slane %v338_v24, 2 }
  0x62   : > { %v340_v26 = vadd.f32 %v339_v25, %v338_v24 }
  0x64   : > { %v341_v27 = vrot.slane %v340_v26, 1 }
  0x66   : > { %v342_v28 = vadd.f32 %v341_v27, %v340_v26 }
  0x68   : > { %v344_v29 = vmul.f32 0.0625, %v342_v28 }
  0x6a   : > { %v345_v30 = vadd.f32 1e-06, %v344_v29 }
  0x6c   : > { %719 = vrcp.f32 %v345_v30  ;;  %380 = vst.msk [vmem:[%s296_s27] sm:$0x1] %vm379_vm5, %v345_v30  ;;  %s1173_s27 = scalar_lea.hbm %s1291_s2, %s632_s24  ;;  %s783_s24 = scalar_lea.vmem %s782_s10, 2048 }
  0x6d   : > { %p785_p6 = scmp.lt.s32.totalorder %s783_s24, %s777_s25 }
  0x6f   : > { %p786_p4 = por %p785_p6, %p784_p5 }
  0x71   : > { %p787_p7 = pnand %p786_p4, %p780_p2 }
  0x79   : > { %v720_v37 = vpop.eup %719 }
  0x7a   : > { %v363_v41 = vmul.f32 %v720_v37, %v305_v2  ;;  %v364_v42 = vmul.f32 %v720_v37, %v306_v3  ;;  %v365_v43 = vmul.f32 %v720_v37, %v307_v31  ;;  %v366_v44 = vmul.f32 %v720_v37, %v308_v32 }
  0x7b   : > { %v367_v48 = vmul.f32 %v720_v37, %v309_v33  ;;  %v368_v49 = vmul.f32 %v720_v37, %v310_v34  ;;  %v369_v50 = vmul.f32 %v720_v37, %v311_v35  ;;  %v370_v51 = vmul.f32 %v720_v37, %v312_v36 }
  0x7c   : > { %371 = vst.msk [vmem:[%s1110_s13] sm:$0xff] %vm333_vm4, %v363_v41  ;;  %372 = vst.msk [vmem:[%s1110_s13 + $0x8] sm:$0xff] %vm333_vm4, %v364_v42  ;;  %v347_v52 = vmul.f32 %v720_v37, %v1095_v0  ;;  %v348_v53 = vmul.f32 %v720_v37, %v1098_v1  ;;  %v349_v54 = vmul.f32 %v720_v37, %v299_v38 }
  0x7d   : > { %373 = vst.msk [vmem:[%s1110_s13 + $0x10] sm:$0xff] %vm333_vm4, %v365_v43  ;;  %374 = vst.msk [vmem:[%s1110_s13 + $0x18] sm:$0xff] %vm333_vm4, %v366_v44  ;;  %v350_v55 = vmul.f32 %v720_v37, %v300_v39  ;;  %v351_v56 = vmul.f32 %v720_v37, %v301_v40  ;;  %v352_v57 = vmul.f32 %v720_v37, %v302_v45 }
  0x7e   : > { %375 = vst.msk [vmem:[%s1110_s13 + $0x20] sm:$0xff] %vm333_vm4, %v367_v48  ;;  %376 = vst.msk [vmem:[%s1110_s13 + $0x28] sm:$0xff] %vm333_vm4, %v368_v49  ;;  %v353_v58 = vmul.f32 %v720_v37, %v303_v46  ;;  %v354_v59 = vmul.f32 %v720_v37, %v304_v47 }
  0x7f   : > { %377 = vst.msk [vmem:[%s1110_s13 + $0x30] sm:$0xff] %vm333_vm4, %v369_v50  ;;  %378 = vst.msk [vmem:[%s1110_s13 + $0x38] sm:$0xff] %vm333_vm4, %v370_v51  ;;  %s1185_s13 = scalar_lea.sflag [#allocation9], %s386_s26 }
  0x80   : > { %355 = vst.msk [vmem:[%s1114_s9] sm:$0xff] %vm333_vm4, %v347_v52  ;;  %356 = vst.msk [vmem:[%s1114_s9 + $0x8] sm:$0xff] %vm333_vm4, %v348_v53 }
  0x81   : > { %357 = vst.msk [vmem:[%s1114_s9 + $0x10] sm:$0xff] %vm333_vm4, %v349_v54  ;;  %358 = vst.msk [vmem:[%s1114_s9 + $0x18] sm:$0xff] %vm333_vm4, %v350_v55 }
  0x82   : > { %790 = shalt.err (!%p787_p7)
}
  0x83   : > { %s791_s21 = scalar_lea.hbm %s1141_s22, 1024  ;;  %s795_s6 = scalar_lea.hbm %s1292_s3, 2048 }
  0x84   : > { %p792_p10 = scmp.ne.s32.totalorder %s1141_s22, %s791_s21  ;;  %p796_p3 = scmp.lt.s32.totalorder %s1141_s22, %s1292_s3 }
  0x85   : > { %p797_p8 = scmp.lt.s32.totalorder %s795_s6, %s791_s21 }
  0x86   : > { %p793_p1 = pnand %p792_p10, %p1008_p9 }
  0x87   : > { %p798_p0 = por %p797_p8, %p796_p3 }
  0x88   : > { %p794_p13 = pneg %p793_p1 }
  0x8a   : > { %p799_p2 = pnand %p798_p0, %p794_p13 }
  0x8c   : > { %802 = shalt.err (!%p799_p2)
}
  0x8d   : > { %s924_s23 = smov 128   ;;  %s925_s25 = smov 8   ;;  %359 = vst.msk [vmem:[%s1114_s9 + $0x20] sm:$0xff] %vm333_vm4, %v351_v56  ;;  %360 = vst.msk [vmem:[%s1114_s9 + $0x28] sm:$0xff] %vm333_vm4, %v352_v57 }
  0x8e   : > { %639 = dma.vmem_to_hbm [thread:$0]  (%p1008_p9), %s1117_s14, 1024, %s1141_s22, %s1185_s13, %s924_s23, %s924_s23, %s925_s25  }
  0x8f   : > { %361 = vst.msk [vmem:[%s1114_s9 + $0x30] sm:$0xff] %vm333_vm4, %v353_v58  ;;  %362 = vst.msk [vmem:[%s1114_s9 + $0x38] sm:$0xff] %vm333_vm4, %v354_v59  ;;  %s803_s18 = scalar_lea.vmem %s1153_s8, 16  ;;  %s926_s10 = smov [#allocation10]  }
  0x90   : > { %p804_p5 = scmp.ne.s32.totalorder %s1153_s8, %s803_s18  ;;  %s807_s24 = sshll.u32 %s926_s10, 4  ;;  %s808_s24 = int_to_ptr.vmem [resolvable:$false] %s807_s24 }
  0x91   : > { %s809_s21 = scalar_lea.vmem %s808_s24, 32  ;;  %p810_p7 = scmp.lt.s32.totalorder %s1153_s8, %s808_s24 }
  0x92   : > { %p805_p6 = pnand %p804_p5, %p1008_p9  ;;  %p811_p10 = scmp.lt.s32.totalorder %s809_s21, %s803_s18 }
  0x94   : > { %p806_p4 = pneg %p805_p6  ;;  %p812_p1 = por %p811_p10, %p810_p7 }
  0x96   : > { %p813_p13 = pnand %p812_p1, %p806_p4 }
  0x98   : > { %816 = shalt.err (!%p813_p13)
}
  0x99   : > { %s817_s14 = scalar_lea.hbm %s1158_s29, 16  ;;  %s821_s26 = scalar_lea.hbm %s1293_s4, 32 }
  0x9a   : > { %p818_p3 = scmp.ne.s32.totalorder %s1158_s29, %s817_s14  ;;  %p822_p2 = scmp.lt.s32.totalorder %s1158_s29, %s1293_s4 }
  0x9b   : > { %p823_p5 = scmp.lt.s32.totalorder %s821_s26, %s817_s14 }
  0x9c   : > { %p819_p8 = pnand %p818_p3, %p1008_p9 }
  0x9d   : > { %p824_p6 = por %p823_p5, %p822_p2 }
  0x9e   : > { %p820_p0 = pneg %p819_p8 }
  0xa0   : > { %p825_p4 = pnand %p824_p6, %p820_p0 }
  0xa2   : > { %828 = shalt.err (!%p825_p4)
}
  0xa3   : > { %640 = dma.vmem_to_hbm [thread:$0]  (%p1008_p9), %s1153_s8, 16, %s1158_s29, %s1185_s13  }
  0xa4   : > { %s382_s7 = scalar_lea.sflag [#allocation4], %s1073_s5  ;;  %s829_s0 = scalar_lea.vmem %s1126_s11, 1024 }
  0xa5   : > { %p830_p7 = scmp.ne.s32.totalorder %s1126_s11, %s829_s0  ;;  %s927_s18 = smov [#allocation7]  }
  0xa6   : > { %s833_s10 = sshll.u32 %s927_s18, 4  ;;  %s834_s10 = int_to_ptr.vmem [resolvable:$false] %s833_s10 }
  0xa7   : > { %p831_p10 = pnand %p830_p7, %p1008_p9  ;;  %s835_s24 = scalar_lea.vmem %s834_s10, 2048 }
  0xa8   : > { %p836_p13 = scmp.lt.s32.totalorder %s1126_s11, %s834_s10  ;;  %p837_p3 = scmp.lt.s32.totalorder %s835_s24, %s829_s0 }
  0xa9   : > { %p832_p1 = pneg %p831_p10 }
  0xaa   : > { %p838_p8 = por %p837_p3, %p836_p13 }
  0xac   : > { %p839_p0 = pnand %p838_p8, %p832_p1 }
  0xae   : > { %842 = shalt.err (!%p839_p0)
}
  0xaf   : > { %s843_s8 = scalar_lea.hbm %s1173_s27, 1024  ;;  %s847_s13 = scalar_lea.hbm %s1291_s2, 2048 }
  0xb0   : > { %p844_p2 = scmp.ne.s32.totalorder %s1173_s27, %s843_s8  ;;  %p848_p4 = scmp.lt.s32.totalorder %s1173_s27, %s1291_s2 }
  0xb1   : > { %p849_p7 = scmp.lt.s32.totalorder %s847_s13, %s843_s8 }
  0xb2   : > { %p845_p5 = pnand %p844_p2, %p1008_p9 }
  0xb3   : > { %p850_p10 = por %p849_p7, %p848_p4 }
  0xb4   : > { %p846_p6 = pneg %p845_p5 }
  0xb6   : > { %p851_p1 = pnand %p850_p10, %p846_p6 }
  0xb8   : > { %854 = shalt.err (!%p851_p1)
}
  0xb9   : > { %638 = dma.vmem_to_hbm [thread:$0]  (%p1008_p9), %s1126_s11, 1024, %s1173_s27, %s382_s7, %s924_s23, %s924_s23, %s925_s25  }
  0xba PF: > { %s451_s9 = sand.u32 1, %s897_s15   ;;  %p652_p13 = pnand %p609_p12, %p1017_p11 }
  0xbb   : > { %s452_s22 = scalar_lea.sflag [#allocation4], %s451_s9 }
  0xbc   : > { %p653_p3 = pneg %p652_p13 }
  0xbe   : > { %888 = dma.done.wait (%p653_p3), %s452_s22, 1024  }
  0xbf   : > { %890 = vsyncadd (%p653_p3), %s452_s22, 4294966272  ;;  %s1306_s28 = sadd.s32 4294967294, %s917_s20  }
  0xc0   : > { %s460_s26 = sand.u32 1, %s1306_s28  }
  0xc1   : > { %s461_s12 = scalar_lea.sflag [#allocation9], %s460_s26 }
  0xc2   : > { %892 = dma.done.wait (%p653_p3), %s461_s12, 1040  }
  0xc3   : > { %894 = vsyncadd (%p653_p3), %s461_s12, 4294966256  ;;  %s27_s20 = sadd.s32 1, %s917_s20   ;;  %s1307_s11 = sld [smem:[#allocation16_spill]] }
  0xc4   : > { %p24_p9 = scmp.ge.s32.totalorder %s27_s20, 4   ;;  %s1308_s30 = sld [smem:[#allocation15_spill]] }
  0xc5   : > { %s1309_s15 = smov %s901_s16  ;;  %s1310_s16 = smov %s905_s17 }
  0xc6   : > { %s1312_s18 = smov %s913_s19  ;;  %26 = sbr.rel (!%p24_p9) target bundleno = 12 (0xc), region = 118 }
  0xc9   : > { %s1311_s17 = smov %s1307_s11 }
  0xca   : > { %s1313_s19 = smov %s1308_s30 }
  0xcb   :  { %474 = vsyncpa [#allocation3], 1 }
  0xcc   :  { %476 = vsyncpa [#allocation3 + $0x1], 1 }
  0xcd   :  { %477 = vsyncpa [#allocation6], 1 }
  0xce   :  { %479 = vsyncpa [#allocation6 + $0x1], 1 }
  0xcf   :  { %480 = vsyncpa [#allocation4], 1 }
  0xd0   :  { %482 = vsyncpa [#allocation4 + $0x1], 1 }
  0xd1   :  { %483 = vsyncpa [#allocation9], 1 }
  0xd2   :  { %485 = vsyncpa [#allocation9 + $0x1], 1 }

</bundles_post_ra>
